<compile_context>
chip_gen: v7x
topology: tpu7x:2x2x1
jax: 0.10.0
libtpu: 0.0.40
codegen_flags: <defaults>
</compile_context>

<pallas_src>
import math

import jax
import jax.numpy as jnp
from jax.experimental import pallas as pl
from jax.experimental.pallas import tpu as pltpu


def _group_linear_kernel(x_ref, w_ref, b_ref, o_ref):
    """One batch-tile x one block-chunk.

    x_ref: (tile_b, bk*in_dim)   w_ref: (bk, in_dim, out_dim)
    b_ref: (1, bk*out_dim)       o_ref: (tile_b, bk*out_dim)
    """
    bk, in_dim, out_dim = w_ref.shape
    for k in range(bk):  # static unroll; one clean 2-D MXU dot per block
        xk = x_ref[:, k * in_dim:(k + 1) * in_dim]
        acc = jnp.dot(xk, w_ref[k], preferred_element_type=jnp.float32)
        acc = acc + b_ref[:, k * out_dim:(k + 1) * out_dim].astype(jnp.float32)
        o_ref[:, k * out_dim:(k + 1) * out_dim] = acc.astype(o_ref.dtype)


def _vmem_budget_bytes():
    # Generation-aware budget (v5e/v6e: 128 MiB, v7x: 64 MiB per core) with
    # headroom for Mosaic internal scratch.  Fall back to the v7x-safe value.
    try:
        cap = int(pltpu.get_tpu_info().vmem_capacity_bytes)
    except Exception:
        cap = 64 * 1024 * 1024
    return (cap * 3) // 4


def _pick_block_chunk(num_blocks, in_dim, out_dim, w_itemsize, budget):
    """Largest divisor bk of num_blocks whose (double-buffered) weight chunk
    fits `budget` while keeping the x/out lane slabs 128-aligned (no alignment
    needed when the chunk covers the whole block axis: blocks then equal the
    full array dims)."""
    divisors = [d for d in range(1, num_blocks + 1) if num_blocks % d == 0]
    for bk in sorted(divisors, reverse=True):
        w_bytes = 2 * bk * in_dim * out_dim * w_itemsize
        aligned = (bk == num_blocks) or (
            (bk * in_dim) % 128 == 0 and (bk * out_dim) % 128 == 0)
        if aligned and w_bytes <= budget:
            return bk
    # TODO(synk): also tile in_dim (K axis, f32 accumulator + pl.when
    # init/finalize) when even a single block's weight exceeds the budget.
    return num_blocks


def _pick_tile_b(batch, cap):
    """Multiple-of-8 divisor of batch, <= cap, giving >=2 grid steps when
    possible (pipelining + v7x core sharding) without any pad+slice."""
    cap = max(8, cap)
    best = None
    t = 8
    while t <= min(cap, batch // 2):
        if batch % t == 0:
            best = t
        t += 8
    if best is not None:
        return best, batch
    if batch <= cap:
        return batch, batch           # single tile; block dim equals full dim
    # TODO(synk): handle ragged remainders with a second small pallas_call
    # instead of pad+slice (two extra HBM passes) for large awkward batches.
    tile = cap - (cap % 8) if cap % 8 else cap
    tile = max(8, tile)
    return tile, pl.cdiv(batch, tile) * tile


def group_linear(x, weight, bias=None, compute_dtype=None):
    """x: (batch, num_blocks, in_dim) -> (batch, num_blocks, out_dim)."""
    batch, num_blocks, in_dim = x.shape
    nb_w, in_dim_w, out_dim = weight.shape
    assert nb_w == num_blocks and in_dim_w == in_dim

    out_dtype = jnp.result_type(x.dtype, weight.dtype)
    if compute_dtype is not None:
        # Optional bf16 path: halves HBM traffic / VMEM; accumulation stays f32.
        x = x.astype(compute_dtype)
        weight = weight.astype(compute_dtype)

    if bias is None:
        bias = jnp.zeros((num_blocks, out_dim), weight.dtype)
    bias = bias.astype(weight.dtype)

    fused_in = num_blocks * in_dim
    fused_out = num_blocks * out_dim
    x_item = jnp.dtype(x.dtype).itemsize
    w_item = jnp.dtype(weight.dtype).itemsize
    o_item = jnp.dtype(out_dtype).itemsize

    budget = _vmem_budget_bytes()

    # Block-axis chunk: whole weight VMEM-resident when it fits, chunked onto
    # an outer grid axis otherwise (so the weight chunk is fetched once per
    # chunk while x is streamed over the inner batch axis).
    bk = _pick_block_chunk(num_blocks, in_dim, out_dim, w_item, budget // 3)
    n_chunks = num_blocks // bk

    # Batch tile derived from the remaining VMEM budget (double-buffered).
    w_vmem = 2 * (bk * in_dim * out_dim + bk * out_dim) * w_item
    row_bytes = 2 * bk * (in_dim * x_item + out_dim * o_item)
    avail = max(budget - w_vmem, 8 * row_bytes)
    cap_b = max(8, (avail // row_bytes) // 8 * 8)
    tile_b, batch_p = _pick_tile_b(batch, min(256, cap_b))

    # Lane-dense 2-D views (free, contiguous reshapes).
    x2 = x.reshape(batch, fused_in)
    b2 = bias.reshape(1, fused_out)
    if batch_p != batch:
        x2 = jnp.pad(x2, ((0, batch_p - batch), (0, 0)))

    est_vmem = w_vmem + tile_b * row_bytes
    vmem_limit = None
    if est_vmem > 12 * 1024 * 1024:
        vmem_limit = min(budget, int(est_vmem * 1.5) + (2 << 20))

    grid = (n_chunks, batch_p // tile_b)   # block-chunk axis OUTER

    cost = pl.CostEstimate(
        flops=2 * batch_p * num_blocks * in_dim * out_dim,
        transcendentals=0,
        bytes_accessed=(batch_p * (fused_in * x_item + fused_out * o_item)
                        + num_blocks * in_dim * out_dim * w_item
                        + fused_out * w_item),
    )

    out2 = pl.pallas_call(
        _group_linear_kernel,
        out_shape=jax.ShapeDtypeStruct((batch_p, fused_out), out_dtype),
        grid_spec=pltpu.PrefetchScalarGridSpec(
            num_scalar_prefetch=0,
            grid=grid,
            in_specs=[
                pl.BlockSpec((tile_b, bk * in_dim), lambda j, i: (i, j)),
                pl.BlockSpec((bk, in_dim, out_dim), lambda j, i: (j, 0, 0)),
                pl.BlockSpec((1, bk * out_dim), lambda j, i: (0, j)),
            ],
            out_specs=pl.BlockSpec((tile_b, bk * out_dim), lambda j, i: (i, j)),
        ),
        compiler_params=pltpu.CompilerParams(
            dimension_semantics=("parallel", "parallel"),
            vmem_limit_bytes=vmem_limit,
        ),
        cost_estimate=cost,
    )(x2, weight, b2)

    if batch_p != batch:
        out2 = out2[:batch]
    return out2.reshape(batch, num_blocks, out_dim)


def init_params(key, in_dim, out_dim, num_blocks, a=None):
    if a is None:
        a = 1.0 / math.sqrt(out_dim)
    kw, kb = jax.random.split(key)
    weight = jax.random.uniform(
        kw, (num_blocks, in_dim, out_dim), jnp.float32, minval=-a, maxval=a)
    bias = jax.random.uniform(
        kb, (num_blocks, out_dim), jnp.float32, minval=-a, maxval=a)
    return weight, bias


if __name__ == "__main__":
    key = jax.random.PRNGKey(0)
    kx, kp, kx2, kp2 = jax.random.split(key, 4)

    # Typical relational-memory shapes (small per-block dims).
    batch, num_blocks, in_dim, out_dim = 8, 4, 32, 32
    x = jax.random.normal(kx, (batch, num_blocks, in_dim), jnp.float32)
    weight, bias = init_params(kp, in_dim, out_dim, num_blocks)
    y = jax.block_until_ready(group_linear(x, weight, bias))
    ref = jnp.einsum("bki,kio->bko", x, weight) + bias[None, :, :]
    assert y.shape == (batch, num_blocks, out_dim)
    assert jnp.allclose(y, ref, atol=1e-4, rtol=1e-4)

    # Larger per-block dims + batch big enough to exercise multi-step tiling.
    b2_, nb2, in2, od2 = 32, 6, 256, 64
    x2 = jax.random.normal(kx2, (b2_, nb2, in2), jnp.float32)
    w2, bias2 = init_params(kp2, in2, od2, nb2)
    y2 = jax.block_until_ready(group_linear(x2, w2, bias2))
    ref2 = jnp.einsum("bki,kio->bko", x2, w2) + bias2[None, :, :]
    assert y2.shape == (b2_, nb2, od2)
    assert jnp.allclose(y2, ref2, atol=1e-4, rtol=1e-4)

    # No-bias path.
    y3 = jax.block_until_ready(group_linear(x, weight, None))
    ref3 = jnp.einsum("bki,kio->bko", x, weight)
    assert jnp.allclose(y3, ref3, atol=1e-4, rtol=1e-4)

    print("KERNEL_OK")
</pallas_src>

<mosaic_0001>
module attributes {stable_mosaic.version = 11 : i64} {
  func.func @_group_linear_kernel(%arg0: i32, %arg1: i32, %arg2: memref<8x128xf32, #tpu.memory_space<vmem>>, %arg3: memref<4x32x32xf32, #tpu.memory_space<vmem>>, %arg4: memref<1x128xf32, #tpu.memory_space<vmem>>, %arg5: memref<8x128xf32, #tpu.memory_space<vmem>>) attributes {dimension_semantics = [#tpu.dimension_semantics<parallel>, #tpu.dimension_semantics<parallel>], iteration_bounds = array<i64: 1, 1>, scalar_prefetch = 0 : i64, scratch_operands = 0 : i64, tpu.core_type = #tpu.core_type<tc>, window_params = [{transform_indices = @transform_0, window_bounds = array<i64: 8, 128>}, {transform_indices = @transform_1, window_bounds = array<i64: 4, 32, 32>}, {transform_indices = @transform_2, window_bounds = array<i64: 1, 128>}, {transform_indices = @transform_3, window_bounds = array<i64: 8, 128>}]} {
    %c0 = arith.constant 0 : index
    %c0_0 = arith.constant 0 : index
    %0 = vector.load %arg2[%c0, %c0_0] : memref<8x128xf32, #tpu.memory_space<vmem>>, vector<8x32xf32>
    %c0_1 = arith.constant 0 : index
    %c0_2 = arith.constant 0 : index
    %c0_3 = arith.constant 0 : index
    %1 = vector.load %arg3[%c0_1, %c0_2, %c0_3] : memref<4x32x32xf32, #tpu.memory_space<vmem>>, vector<1x32x32xf32>
    %2 = vector.shape_cast %1 : vector<1x32x32xf32> to vector<32x32xf32>
    %cst = arith.constant dense<0.000000e+00> : vector<8x32xf32>
    %3 = tpu.matmul %0, %2, %cst {dimension_numbers = #tpu.dot_dimension_numbers<[1], [0], [0], [1], [0, 0, 1, 1], [], []>} : vector<8x32xf32>, vector<32x32xf32>, vector<8x32xf32> -> vector<8x32xf32>
    %c0_4 = arith.constant 0 : index
    %c0_5 = arith.constant 0 : index
    %4 = vector.load %arg4[%c0_4, %c0_5] : memref<1x128xf32, #tpu.memory_space<vmem>>, vector<1x32xf32>
    %5 = vector.broadcast %4 : vector<1x32xf32> to vector<8x32xf32>
    %6 = arith.addf %3, %5 : vector<8x32xf32>
    %c0_6 = arith.constant 0 : index
    %c0_7 = arith.constant 0 : index
    %7 = vector.load %arg5[%c0_6, %c0_7] : memref<8x128xf32, #tpu.memory_space<vmem>>, vector<8x32xf32>
    tpu.vector_store %arg5[%c0_6, %c0_7], %6 {strides = array<i32>} : memref<8x128xf32, #tpu.memory_space<vmem>>, vector<8x32xf32>,
    %c0_8 = arith.constant 0 : index
    %c32 = arith.constant 32 : index
    %8 = vector.load %arg2[%c0_8, %c32] : memref<8x128xf32, #tpu.memory_space<vmem>>, vector<8x32xf32>
    %c1 = arith.constant 1 : index
    %c0_9 = arith.constant 0 : index
    %c0_10 = arith.constant 0 : index
    %9 = vector.load %arg3[%c1, %c0_9, %c0_10] : memref<4x32x32xf32, #tpu.memory_space<vmem>>, vector<1x32x32xf32>
    %10 = vector.shape_cast %9 : vector<1x32x32xf32> to vector<32x32xf32>
    %cst_11 = arith.constant dense<0.000000e+00> : vector<8x32xf32>
    %11 = tpu.matmul %8, %10, %cst_11 {dimension_numbers = #tpu.dot_dimension_numbers<[1], [0], [0], [1], [0, 0, 1, 1], [], []>} : vector<8x32xf32>, vector<32x32xf32>, vector<8x32xf32> -> vector<8x32xf32>
    %c0_12 = arith.constant 0 : index
    %c32_13 = arith.constant 32 : index
    %12 = vector.load %arg4[%c0_12, %c32_13] : memref<1x128xf32, #tpu.memory_space<vmem>>, vector<1x32xf32>
    %13 = vector.broadcast %12 : vector<1x32xf32> to vector<8x32xf32>
    %14 = arith.addf %11, %13 : vector<8x32xf32>
    %c0_14 = arith.constant 0 : index
    %c32_15 = arith.constant 32 : index
    %15 = vector.load %arg5[%c0_14, %c32_15] : memref<8x128xf32, #tpu.memory_space<vmem>>, vector<8x32xf32>
    tpu.vector_store %arg5[%c0_14, %c32_15], %14 {strides = array<i32>} : memref<8x128xf32, #tpu.memory_space<vmem>>, vector<8x32xf32>,
    %c0_16 = arith.constant 0 : index
    %c64 = arith.constant 64 : index
    %16 = vector.load %arg2[%c0_16, %c64] : memref<8x128xf32, #tpu.memory_space<vmem>>, vector<8x32xf32>
    %c2 = arith.constant 2 : index
    %c0_17 = arith.constant 0 : index
    %c0_18 = arith.constant 0 : index
    %17 = vector.load %arg3[%c2, %c0_17, %c0_18] : memref<4x32x32xf32, #tpu.memory_space<vmem>>, vector<1x32x32xf32>
    %18 = vector.shape_cast %17 : vector<1x32x32xf32> to vector<32x32xf32>
    %cst_19 = arith.constant dense<0.000000e+00> : vector<8x32xf32>
    %19 = tpu.matmul %16, %18, %cst_19 {dimension_numbers = #tpu.dot_dimension_numbers<[1], [0], [0], [1], [0, 0, 1, 1], [], []>} : vector<8x32xf32>, vector<32x32xf32>, vector<8x32xf32> -> vector<8x32xf32>
    %c0_20 = arith.constant 0 : index
    %c64_21 = arith.constant 64 : index
    %20 = vector.load %arg4[%c0_20, %c64_21] : memref<1x128xf32, #tpu.memory_space<vmem>>, vector<1x32xf32>
    %21 = vector.broadcast %20 : vector<1x32xf32> to vector<8x32xf32>
    %22 = arith.addf %19, %21 : vector<8x32xf32>
    %c0_22 = arith.constant 0 : index
    %c64_23 = arith.constant 64 : index
    %23 = vector.load %arg5[%c0_22, %c64_23] : memref<8x128xf32, #tpu.memory_space<vmem>>, vector<8x32xf32>
    tpu.vector_store %arg5[%c0_22, %c64_23], %22 {strides = array<i32>} : memref<8x128xf32, #tpu.memory_space<vmem>>, vector<8x32xf32>,
    %c0_24 = arith.constant 0 : index
    %c96 = arith.constant 96 : index
    %24 = vector.load %arg2[%c0_24, %c96] : memref<8x128xf32, #tpu.memory_space<vmem>>, vector<8x32xf32>
    %c3 = arith.constant 3 : index
    %c0_25 = arith.constant 0 : index
    %c0_26 = arith.constant 0 : index
    %25 = vector.load %arg3[%c3, %c0_25, %c0_26] : memref<4x32x32xf32, #tpu.memory_space<vmem>>, vector<1x32x32xf32>
    %26 = vector.shape_cast %25 : vector<1x32x32xf32> to vector<32x32xf32>
    %cst_27 = arith.constant dense<0.000000e+00> : vector<8x32xf32>
    %27 = tpu.matmul %24, %26, %cst_27 {dimension_numbers = #tpu.dot_dimension_numbers<[1], [0], [0], [1], [0, 0, 1, 1], [], []>} : vector<8x32xf32>, vector<32x32xf32>, vector<8x32xf32> -> vector<8x32xf32>
    %c0_28 = arith.constant 0 : index
    %c96_29 = arith.constant 96 : index
    %28 = vector.load %arg4[%c0_28, %c96_29] : memref<1x128xf32, #tpu.memory_space<vmem>>, vector<1x32xf32>
    %29 = vector.broadcast %28 : vector<1x32xf32> to vector<8x32xf32>
    %30 = arith.addf %27, %29 : vector<8x32xf32>
    %c0_30 = arith.constant 0 : index
    %c96_31 = arith.constant 96 : index
    %31 = vector.load %arg5[%c0_30, %c96_31] : memref<8x128xf32, #tpu.memory_space<vmem>>, vector<8x32xf32>
    tpu.vector_store %arg5[%c0_30, %c96_31], %30 {strides = array<i32>} : memref<8x128xf32, #tpu.memory_space<vmem>>, vector<8x32xf32>,
    return
  }
  func.func @transform_0(%arg0: i32, %arg1: i32) -> (i32, i32) {
    %c0_i32 = arith.constant 0 : i32
    return %arg1, %arg0 : i32, i32
  }
  func.func @transform_1(%arg0: i32, %arg1: i32) -> (i32, i32, i32) {
    %c0_i32 = arith.constant 0 : i32
    %c0_i32_0 = arith.constant 0 : i32
    %c0_i32_1 = arith.constant 0 : i32
    return %arg0, %c0_i32, %c0_i32_0 : i32, i32, i32
  }
  func.func @transform_2(%arg0: i32, %arg1: i32) -> (i32, i32) {
    %c0_i32 = arith.constant 0 : i32
    %c0_i32_0 = arith.constant 0 : i32
    return %c0_i32, %arg0 : i32, i32
  }
  func.func @transform_3(%arg0: i32, %arg1: i32) -> (i32, i32) {
    %c0_i32 = arith.constant 0 : i32
    return %arg1, %arg0 : i32, i32
  }
}

</mosaic_0001>

<bundles_post_ra>
// kernel: tpu_custom_call.1
= control target key start
LH: loop header
LB: loop body
LE: loop exit
PB: predicated region body
PF: predicated region fallthrough
CT: control target
= control target key end

     0   :  { %8 = vsyncpa [#allocation3], 0  ;;  %s706_s0 = inlined_call_operand.hbm [shape: f32[8,128], index: 0, kind: input, shape index: {}]   ;;  %s707_s1 = inlined_call_operand.hbm [shape: f32[4,32,32], index: 1, kind: input, shape index: {}]   ;;  %s708_s2 = inlined_call_operand.vmem [shape: f32[1,128], index: 2, kind: input, shape index: {}]   ;;  %s709_s3 = inlined_call_operand.hbm [shape: f32[8,128], index: 3, kind: output, shape index: {}]  }
   0x1   :  { %9 = vsyncpa [#allocation6], 0 }
   0x2   :  { %10 = vsyncpa [#allocation4], 0  ;;  %s611_s12 = smov [#allocation2]   ;;  %s612_s14 = smov [#allocation5]  }
   0x3   :  { %s17_s13 = sshll.u32 %s611_s12, 4  ;;  %s26_s15 = sshll.u32 %s612_s14, 4  ;;  %s18_s13 = int_to_ptr.vmem [resolvable:$true] %s17_s13  ;;  %s642_s15 = int_to_ptr.vmem [resolvable:$true] %s26_s15 }
   0x4   :  { %s539_s18 = scalar_lea.hbm %s706_s0, 128 }
   0x5   :  { %p540_p0 = scmp.ne.s32.totalorder %s706_s0, %s539_s18  ;;  %p543_p1 = scmp.lt.u32.totalorder %s539_s18, %s706_s0 }
   0x7   :  { %p545_p2 = pnand %p543_p1, %p540_p0 }
   0x9   :  { %548 = shalt.err (!%p545_p2)
}
   0xa   :  { %s549_s23 = scalar_lea.vmem %s18_s13, 128  ;;  %p554_p4 = scmp.lt.s32.totalorder %s18_s13, %s18_s13 }
   0xb   :  { %p550_p3 = scmp.ne.s32.totalorder %s18_s13, %s549_s23  ;;  %p555_p5 = scmp.lt.s32.totalorder %s549_s23, %s549_s23 }
   0xd   :  { %p556_p6 = por %p555_p5, %p554_p4 }
   0xf   :  { %p557_p7 = pnand %p556_p6, %p550_p3 }
  0x11   :  { %560 = shalt.err (!%p557_p7)
}
  0x12   :  { %20 = dma.hbm_to_vmem [thread:$0]  %s706_s0, 128, %s18_s13, [#allocation3]  }
  0x13   :  { %s561_s28 = scalar_lea.hbm %s707_s1, 2048 }
  0x14   :  { %p562_p8 = scmp.ne.s32.totalorder %s707_s1, %s561_s28  ;;  %p565_p9 = scmp.lt.u32.totalorder %s561_s28, %s707_s1 }
  0x16   :  { %p567_p10 = pnand %p565_p9, %p562_p8 }
  0x18   :  { %570 = shalt.err (!%p567_p10)
}
  0x19   :  { %s571_s6 = scalar_lea.vmem %s642_s15, 2048  ;;  %p576_p12 = scmp.lt.s32.totalorder %s642_s15, %s642_s15 }
  0x1a   :  { %p572_p11 = scmp.ne.s32.totalorder %s642_s15, %s571_s6  ;;  %p577_p13 = scmp.lt.s32.totalorder %s571_s6, %s571_s6 }
  0x1c   :  { %p578_p0 = por %p577_p13, %p576_p12 }
  0x1e   :  { %p579_p1 = pnand %p578_p0, %p572_p11 }
  0x20   :  { %582 = shalt.err (!%p579_p1)
}
  0x21   :  { %s613_s0 = smov 128   ;;  %s614_s7 = smov 8  }
  0x22   :  { %32 = dma.hbm_to_vmem [thread:$0]  %s707_s1, 2048, %s642_s15, [#allocation6], %s613_s0, %s613_s0, %s614_s7  }
  0x23   :  { %605 = dma.done.wait [#allocation3], 128  }
  0x24   :  { %606 = vsyncadd [#allocation3], 4294967168 }
  0x25   :  { %607 = dma.done.wait [#allocation6], 2048  }
  0x26   :  { %608 = vsyncadd [#allocation6], 4294965248  ;;  %v615_v0 = vmov 0.0|0.0   ;;  %vm616_vm0 = vmmov 0   ;;  %v617_v1 = vmov 0.0   ;;  %v128_v2 = vld [vmem:[#allocation2] sm:$0xff] }
  0x27   :  { %504 = vmatprep.subr.bf16.mxu0 %v615_v0  ;;  %510 = vmatprep.subr.bf16.mxu1 %v615_v0  ;;  %v42_v3 = vld [vmem:[#allocation5] sm:$0xff]  ;;  %v43_v4 = vld [vmem:[#allocation5 + $0x8] sm:$0xff]  ;;  %s618_s10 = smov 96   ;;  %s619_s1 = smov 32   ;;  %v44_v8 = vld [vmem:[#allocation5 + $0x10] sm:$0xff]  ;;  %vm53_vm1 = vcmask 261120  }
  0x28   :  { %468 = vmatprep.mubr.msk.f32.mxu0 %vm616_vm0, %v617_v1  ;;  %479 = vmatprep.mubr.msk.f32.mxu1 %vm616_vm0, %v617_v1  ;;  %v505_v5 = vpack.c.bf16 %v43_v4, %v42_v3  ;;  %v130_v6 = vld [vmem:[#allocation5 + $0x20] sm:$0xff]  ;;  %v131_v7 = vld [vmem:[#allocation5 + $0x28] sm:$0xff]  ;;  %v45_v10 = vld [vmem:[#allocation5 + $0x18] sm:$0xff]  ;;  %s620_s11 = smov 64   ;;  %vm222_vm2 = vcmask 523520   ;;  %vm318_vm3 = vcmask 785920  }
  0x29   :  { %141 = vrot.lane.b32.xlu0 %v128_v2, %s618_s10  ;;  %333 = vrot.lane.b32.xlu1 %v128_v2, %s619_s1  ;;  %v511_v9 = vpack.c.bf16 %v131_v7, %v130_v6  ;;  %v132_v11 = vld [vmem:[#allocation5 + $0x30] sm:$0xff]  ;;  %v133_v12 = vld [vmem:[#allocation5 + $0x38] sm:$0xff]  ;;  %v508_v13 = vpack.c.bf16 %v45_v10, %v44_v8  ;;  %v226_v15 = vld [vmem:[#allocation5 + $0x40] sm:$0xff]  ;;  %vm414_vm4 = vcmask 1048320  }
  0x2a   :  { %506 = vmatpush3.bf16.msra.mxu0 %v505_v5  ;;  %v514_v14 = vpack.c.bf16 %v133_v12, %v132_v11  ;;  %v227_v16 = vld [vmem:[#allocation5 + $0x48] sm:$0xff]  ;;  %v434_v17 = vld [vmem:[%s708_s2] ss:$0 sm:$0xff]  ;;  %v228_v19 = vld [vmem:[#allocation5 + $0x50] sm:$0xff]  ;;  %s621_s2 = smov [#allocation7]  }
  0x2b   :  { %512 = vmatpush3.bf16.msra.mxu1 %v511_v9  ;;  %507 = vmatprep.subr.bf16.mxu0 %v615_v0  ;;  %v517_v18 = vpack.c.bf16 %v227_v16, %v226_v15  ;;  %v229_v20 = vld [vmem:[#allocation5 + $0x58] sm:$0xff]  ;;  %v322_v22 = vld [vmem:[#allocation5 + $0x60] sm:$0xff]  ;;  %v323_v23 = vld [vmem:[#allocation5 + $0x68] sm:$0xff]  ;;  %s422_s14 = sshll.u32 %s621_s2, 4  ;;  %s423_s14 = int_to_ptr.vmem [resolvable:$true] %s422_s14 }
  0x2c   :  { %513 = vmatprep.subr.bf16.mxu1 %v615_v0  ;;  %v520_v21 = vpack.c.bf16 %v229_v20, %v228_v19  ;;  %v523_v24 = vpack.c.bf16 %v323_v23, %v322_v22  ;;  %v324_v25 = vld [vmem:[#allocation5 + $0x70] sm:$0xff]  ;;  %v325_v26 = vld [vmem:[#allocation5 + $0x78] sm:$0xff]  ;;  %s583_s15 = scalar_lea.vmem %s423_s14, 128  ;;  %p588_p3 = scmp.lt.s32.totalorder %s423_s14, %s423_s14 }
  0x2d   :  { %237 = vrot.lane.b32.xlu0 %v128_v2, %s620_s11  ;;  %143 = vrot.lane.b32.xlu1 %v434_v17, %s618_s10  ;;  %v526_v28 = vpack.c.bf16 %v325_v26, %v324_v25  ;;  %p584_p2 = scmp.ne.s32.totalorder %s423_s14, %s583_s15  ;;  %p589_p4 = scmp.lt.s32.totalorder %s583_s15, %s583_s15 }
  0x2e   :  { %509 = vmatpush3.bf16.msra.mxu0 %v508_v13 }
  0x2f   :  { %515 = vmatpush3.bf16.msra.mxu1 %v514_v14  ;;  %516 = vmatprep.subr.bf16.mxu0 %v615_v0  ;;  %p590_p5 = por %p589_p4, %p588_p3 }
  0x30   :  { %522 = vmatprep.subr.bf16.mxu1 %v615_v0 }
  0x31   :  { %239 = vrot.lane.b32.xlu0 %v434_v17, %s620_s11  ;;  %469 = vmatmul.mubr.msk.f32.vlgmr.msra.gmra.mrb[0].mxu0 %vm53_vm1, %v128_v2  ;;  %p591_p6 = pnand %p590_p5, %p584_p2 }
  0x32   :  { %335 = vrot.lane.b32.xlu1 %v434_v17, %s619_s1  ;;  %518 = vmatpush3.bf16.msra.mxu0 %v517_v18 }
  0x33   :  { %490 = vmatprep.mubr.msk.f32.mxu0 %vm616_vm0, %v617_v1  ;;  %519 = vmatprep.subr.bf16.mxu0 %v615_v0 }
  0x36   :  { %521 = vmatpush3.bf16.msra.mxu0 %v520_v21 }
  0x9b   :  { %v142_v27 = vpop.permute.xlu0 %141  ;;  %v334_v30 = vpop.permute.xlu1 %333 }
  0x9c   :  { %480 = vmatmul.mubr.msk.f32.vlgmr.msra.gmra.mrb[0].mxu1 %vm53_vm1, %v142_v27 }
  0x9d   :  { %524 = vmatpush3.bf16.msra.mxu1 %v523_v24  ;;  %501 = vmatprep.mubr.msk.f32.mxu1 %vm616_vm0, %v617_v1 }
  0x9e   :  { %525 = vmatprep.subr.bf16.mxu1 %v615_v0 }
  0x9f   :  { %v238_v29 = vpop.permute.xlu0 %237  ;;  %v144_v34 = vpop.permute.xlu1 %143 }
  0xa0   :  { %491 = vmatmul.mubr.msk.f32.vlgmr.msra.gmra.mrb[2].mxu0 %vm53_vm1, %v238_v29 }
  0xa1   :  { %527 = vmatpush3.bf16.msra.mxu1 %v526_v28 }
  0xa3   :  { %v240_v38 = vpop.permute.xlu0 %239 }
  0xa4   :  { %502 = vmatmul.mubr.msk.f32.vlgmr.msra.gmra.mrb[2].mxu1 %vm53_vm1, %v334_v30  ;;  %v336_v42 = vpop.permute.xlu1 %335 }
 0x104   :  { %v123_v31 = vpop.f32.mrb[0].mxu0 }
 0x105   :  { %v124_v32 = vadd.f32 %v434_v17, %v123_v31  ;;  %v470_v33 = vpop.f32.mrb[1].mxu0 }
 0x107   :  { %127 = vst.msk [vmem:[#allocation7] sm:$0xff] %vm53_vm1, %v124_v32 }
 0x16f   :  { %v214_v35 = vpop.f32.mrb[0].mxu1 }
 0x170   :  { %v215_v36 = vadd.f32 %v214_v35, %v144_v34  ;;  %v481_v37 = vpop.f32.mrb[1].mxu1 }
 0x172   :  { %219 = vrot.lane.b32.xlu0 %v215_v36, %s619_s1 }
 0x173   :  { %v310_v39 = vpop.f32.mrb[2].mxu0 }
 0x174   :  { %v311_v40 = vadd.f32 %v310_v39, %v240_v38  ;;  %v492_v41 = vpop.f32.mrb[3].mxu0 }
 0x176   :  { %315 = vrot.lane.b32.xlu1 %v311_v40, %s620_s11 }
 0x177   :  { %v406_v43 = vpop.f32.mrb[2].mxu1 }
 0x178   :  { %v407_v44 = vadd.f32 %v406_v43, %v336_v42  ;;  %v503_v45 = vpop.f32.mrb[3].mxu1 }
 0x17a   :  { %411 = vrot.lane.b32.xlu0 %v407_v44, %s618_s10 }
 0x1e4   :  { %v220_v46 = vpop.permute.xlu0 %219 }
 0x1e5   :  { %223 = vst.msk [vmem:[#allocation7] sm:$0xff] %vm222_vm2, %v220_v46 }
 0x1e8   :  { %v316_v47 = vpop.permute.xlu1 %315 }
 0x1e9   :  { %319 = vst.msk [vmem:[#allocation7] sm:$0xff] %vm318_vm3, %v316_v47 }
 0x1ec   :  { %v412_v48 = vpop.permute.xlu0 %411 }
 0x1ed   :  { %415 = vst.msk [vmem:[#allocation7] sm:$0xff] %vm414_vm4, %v412_v48 }
 0x1ee   :  { %594 = shalt.err (!%p591_p6)
}
 0x1ef   :  { %s595_s18 = scalar_lea.hbm %s709_s3, 128 }
 0x1f0   :  { %p596_p7 = scmp.ne.s32.totalorder %s709_s3, %s595_s18  ;;  %p599_p8 = scmp.lt.u32.totalorder %s595_s18, %s709_s3 }
 0x1f2   :  { %p601_p9 = pnand %p599_p8, %p596_p7 }
 0x1f4   :  { %604 = shalt.err (!%p601_p9)
}
 0x1f5   :  { %425 = dma.vmem_to_hbm [thread:$0]  %s423_s14, 128, %s709_s3, [#allocation4]  }
 0x1f6   :  { %609 = dma.done.wait [#allocation4], 128  }
 0x1f7   :  { %610 = vsyncadd [#allocation4], 4294967168 }
 0x1f8   :  { %429 = vsyncpa [#allocation3], 1 }
 0x1f9   :  { %430 = vsyncpa [#allocation6], 1 }
 0x1fa   :  { %431 = vsyncpa [#allocation4], 1 }

</bundles_post_ra>
